<compile_context>
chip_gen: v6e
topology: v6e:2x2x1
jax: 0.10.0
libtpu: 0.0.40
codegen_flags: <defaults>
</compile_context>

<pallas_src>
import functools

import jax
import jax.numpy as jnp
from jax.experimental import pallas as pl
from jax.experimental.pallas import tpu as pltpu


_LANE = 1024          # lane-dense last dim (multiple of 128) -> unmasked vst
_MAX_SUBLANE = 512    # rows per tile (multiple of 8); (512, 1024) f32 = 2 MiB


def _bias_kernel(x_ref, bias_ref, inv_scale_ref, o_ref, *, norm: bool, rescale: bool):
    x = x_ref[...]
    b = bias_ref[0]
    # norm / rescale are Python (static) flags -> compile-time branch, matching
    # the PyTorch control flow exactly.
    out = x - b if norm else x + b
    if rescale:
        out = out * inv_scale_ref[0]   # exact 1/scale precomputed in the wrapper
    o_ref[...] = out


def _round_up(n: int, m: int) -> int:
    return ((n + m - 1) // m) * m


def bias_layer(x, bias, scale, norm: bool, rescale: bool = False):
    """x: any-shape float array (e.g. NCHW); bias, scale: scalar parameters."""
    orig_shape = x.shape
    compute_dtype = jnp.result_type(
        x.dtype, jnp.asarray(bias).dtype, jnp.asarray(scale).dtype)
    total = x.size

    # Flatten to a wide, lane-dense 2-D slab and pad so a (tm, _LANE) tile grid
    # covers it exactly; the pad region is sliced off afterwards.
    n_rows = pl.cdiv(total, _LANE)
    tm = min(_MAX_SUBLANE, _round_up(max(n_rows, 1), 8))
    padded_rows = _round_up(n_rows, tm)
    padded_total = padded_rows * _LANE

    flat = x.reshape(-1).astype(compute_dtype)
    if padded_total != total:
        flat = jnp.pad(flat, (0, padded_total - total))
    x2d = flat.reshape(padded_rows, _LANE)

    bias1 = jnp.asarray(bias, dtype=compute_dtype).reshape(1)
    if rescale:
        inv_scale1 = (1.0 / jnp.asarray(scale, dtype=compute_dtype)).reshape(1)
    else:
        inv_scale1 = jnp.ones((1,), dtype=compute_dtype)   # unused by the kernel

    kernel = functools.partial(_bias_kernel, norm=norm, rescale=rescale)
    grid = (padded_rows // tm,)

    out2d = pl.pallas_call(
        kernel,
        out_shape=jax.ShapeDtypeStruct((padded_rows, _LANE), compute_dtype),
        grid=grid,
        in_specs=[
            pl.BlockSpec((tm, _LANE), lambda i: (i, 0)),    # streamed, double-buffered
            pl.BlockSpec(memory_space=pltpu.SMEM),          # bias scalar (1,)
            pl.BlockSpec(memory_space=pltpu.SMEM),          # 1/scale scalar (1,)
        ],
        out_specs=pl.BlockSpec((tm, _LANE), lambda i: (i, 0)),
        input_output_aliases={0: 0},                        # reuse x's HBM buffer
        compiler_params=pltpu.CompilerParams(
            dimension_semantics=("parallel",),              # shard across TCs on v7x
            vmem_limit_bytes=32 * 1024 * 1024,
        ),
    )(x2d, bias1, inv_scale1)

    out_flat = out2d.reshape(-1)
    if padded_total != total:
        out_flat = out_flat[:total]
    return out_flat.reshape(orig_shape)


if __name__ == "__main__":
    key = jax.random.PRNGKey(0)
    kx, kb, ks = jax.random.split(key, 3)

    B, C, H, W = 2, 4, 16, 16
    x = jax.random.normal(kx, (B, C, H, W), dtype=jnp.float32)

    # Deterministic scalar parameter init (the module just wraps the tensors
    # it is given).
    init_bias = jax.random.normal(kb, (), dtype=jnp.float32)
    init_scale = jax.random.uniform(ks, (), dtype=jnp.float32) + 0.5  # keep > 0

    # Exercise both static branches.
    out_norm = bias_layer(x, init_bias, init_scale, norm=True, rescale=False)
    out_resc = bias_layer(x, init_bias, init_scale, norm=False, rescale=True)
    jax.block_until_ready(out_norm)
    jax.block_until_ready(out_resc)

    # Reference check in plain JAX.
    ref_norm = x - init_bias
    ref_resc = (x + init_bias) / init_scale
    assert jnp.allclose(out_norm, ref_norm, atol=1e-6)
    assert jnp.allclose(out_resc, ref_resc, atol=1e-6)

    print("KERNEL_OK")
</pallas_src>

<mosaic_0001>
module attributes {stable_mosaic.version = 11 : i64} {
  func.func @_bias_kernel(%arg0: i32, %arg1: memref<8x1024xf32, #tpu.memory_space<vmem>>, %arg2: memref<1xf32, #tpu.memory_space<smem>>, %arg3: memref<1xf32, #tpu.memory_space<smem>>, %arg4: memref<8x1024xf32, #tpu.memory_space<vmem>>) attributes {dimension_semantics = [#tpu.dimension_semantics<parallel>], iteration_bounds = array<i64: 1>, scalar_prefetch = 0 : i64, scratch_operands = 0 : i64, tpu.core_type = #tpu.core_type<tc>, window_params = [{transform_indices = @transform_0, window_bounds = array<i64: 8, 1024>}, {transform_indices = @transform_1, window_bounds = array<i64: 1>}, {transform_indices = @transform_2, window_bounds = array<i64: 1>}, {transform_indices = @transform_3, window_bounds = array<i64: 8, 1024>}]} {
    %c0 = arith.constant 0 : index
    %c0_0 = arith.constant 0 : index
    %0 = vector.load %arg1[%c0, %c0_0] : memref<8x1024xf32, #tpu.memory_space<vmem>>, vector<8x1024xf32>
    %c0_1 = arith.constant 0 : index
    %1 = memref.load %arg2[%c0_1] : memref<1xf32, #tpu.memory_space<smem>>
    %2 = vector.broadcast %1 : f32 to vector<8x1024xf32>
    %3 = arith.subf %0, %2 : vector<8x1024xf32>
    %c0_2 = arith.constant 0 : index
    %c0_3 = arith.constant 0 : index
    %4 = vector.load %arg4[%c0_2, %c0_3] : memref<8x1024xf32, #tpu.memory_space<vmem>>, vector<8x1024xf32>
    tpu.vector_store %arg4[%c0_2, %c0_3], %3 {strides = array<i32>} : memref<8x1024xf32, #tpu.memory_space<vmem>>, vector<8x1024xf32>,
    return
  }
  func.func @transform_0(%arg0: i32) -> (i32, i32) {
    %c0_i32 = arith.constant 0 : i32
    %c0_i32_0 = arith.constant 0 : i32
    return %arg0, %c0_i32 : i32, i32
  }
  func.func @transform_1(%arg0: i32) -> i32 {
    %c0_i32 = arith.constant 0 : i32
    %c0_i32_0 = arith.constant 0 : i32
    return %c0_i32 : i32
  }
  func.func @transform_2(%arg0: i32) -> i32 {
    %c0_i32 = arith.constant 0 : i32
    %c0_i32_0 = arith.constant 0 : i32
    return %c0_i32 : i32
  }
  func.func @transform_3(%arg0: i32) -> (i32, i32) {
    %c0_i32 = arith.constant 0 : i32
    %c0_i32_0 = arith.constant 0 : i32
    return %arg0, %c0_i32 : i32, i32
  }
}

</mosaic_0001>

<bundles_post_ra>
// kernel: tpu_custom_call.1
= control target key start
LH: loop header
LB: loop body
LE: loop exit
PB: predicated region body
PF: predicated region fallthrough
CT: control target
= control target key end

     0   :  { %10 = vsyncpa [#allocation5], 0  ;;  %s147_s0 = inlined_call_operand.hbm [shape: f32[8,1024], index: 0, kind: input, shape index: {}, may-alias: {0,3}]   ;;  %s148_s1 = inlined_call_operand.<no memory space> [shape: f32[1], index: 1, kind: input, shape index: {}]   ;;  %s149_s2 = inlined_call_operand.<no memory space> [shape: f32[1], index: 2, kind: input, shape index: {}]   ;;  %s150_s3 = inlined_call_operand.hbm [shape: f32[8,1024], index: 3, kind: output, shape index: {}, may-alias: {0,3}]  }
   0x1   :  { %11 = vsyncpa [#allocation6], 0  ;;  %s116_s12 = smov [#allocation4]  }
   0x2   :  { %s18_s13 = sshll.u32 %s116_s12, 4  ;;  %s19_s13 = int_to_ptr.vmem [resolvable:$true] %s18_s13 }
   0x3   :  { %s80_s14 = scalar_lea.vmem %s19_s13, 1024  ;;  %p85_p1 = scmp.lt.s32.totalorder %s19_s13, %s19_s13 }
   0x4   :  { %p81_p0 = scmp.ne.s32.totalorder %s19_s13, %s80_s14  ;;  %p86_p2 = scmp.lt.s32.totalorder %s80_s14, %s80_s14 }
   0x6   :  { %p87_p3 = por %p86_p2, %p85_p1 }
   0x8   :  { %p88_p4 = pnand %p87_p3, %p81_p0 }
   0xa   :  { %91 = shalt.err (!%p88_p4)
}
   0xb   :  { %21 = dma.hbm_to_vmem [thread:$0]  %s147_s0, 1024, %s19_s13, [#allocation5]  }
   0xc   :  { %112 = dma.done.wait [#allocation5], 1024  }
   0xd   :  { %113 = vsyncadd [#allocation5], 4294966272  ;;  %v38_v0 = vstv %s148_s1  ;;  %v29_v1 = vld [vmem:[#allocation4] sm:$0xff]  ;;  %v30_v2 = vld [vmem:[#allocation4 + $0x8] sm:$0xff]  ;;  %s117_s18 = smov [#allocation7]  }
   0xe   :  { %v31_v3 = vld [vmem:[#allocation4 + $0x10] sm:$0xff]  ;;  %s61_s19 = sshll.u32 %s117_s18, 4  ;;  %v39_v4 = vsub.f32 %v29_v1, %v38_v0  ;;  %v40_v5 = vsub.f32 %v30_v2, %v38_v0  ;;  %v32_v7 = vld [vmem:[#allocation4 + $0x18] sm:$0xff]  ;;  %v33_v8 = vld [vmem:[#allocation4 + $0x20] sm:$0xff]  ;;  %s62_s19 = int_to_ptr.vmem [resolvable:$true] %s61_s19 }
   0xf   :  { %v41_v6 = vsub.f32 %v31_v3, %v38_v0  ;;  %v34_v9 = vld [vmem:[#allocation4 + $0x28] sm:$0xff]  ;;  %v42_v10 = vsub.f32 %v32_v7, %v38_v0  ;;  %v43_v11 = vsub.f32 %v33_v8, %v38_v0  ;;  %v35_v13 = vld [vmem:[#allocation4 + $0x30] sm:$0xff]  ;;  %v36_v14 = vld [vmem:[#allocation4 + $0x38] sm:$0xff]  ;;  %s92_s0 = scalar_lea.vmem %s62_s19, 1024  ;;  %p97_p6 = scmp.lt.s32.totalorder %s62_s19, %s62_s19 }
  0x10   :  { %v44_v12 = vsub.f32 %v34_v9, %v38_v0  ;;  %47 = vst [vmem:[#allocation7] sm:$0xff] %v39_v4  ;;  %48 = vst [vmem:[#allocation7 + $0x8] sm:$0xff] %v40_v5  ;;  %v45_v15 = vsub.f32 %v35_v13, %v38_v0  ;;  %v46_v16 = vsub.f32 %v36_v14, %v38_v0  ;;  %p93_p5 = scmp.ne.s32.totalorder %s62_s19, %s92_s0  ;;  %p98_p7 = scmp.lt.s32.totalorder %s92_s0, %s92_s0 }
  0x11   :  { %49 = vst [vmem:[#allocation7 + $0x10] sm:$0xff] %v41_v6  ;;  %50 = vst [vmem:[#allocation7 + $0x18] sm:$0xff] %v42_v10 }
  0x12   :  { %51 = vst [vmem:[#allocation7 + $0x20] sm:$0xff] %v43_v11  ;;  %52 = vst [vmem:[#allocation7 + $0x28] sm:$0xff] %v44_v12  ;;  %p99_p8 = por %p98_p7, %p97_p6 }
  0x13   :  { %53 = vst [vmem:[#allocation7 + $0x30] sm:$0xff] %v45_v15  ;;  %54 = vst [vmem:[#allocation7 + $0x38] sm:$0xff] %v46_v16 }
  0x14   :  { %p100_p9 = pnand %p99_p8, %p93_p5 }
  0x16   :  { %103 = shalt.err (!%p100_p9)
}
  0x17   :  { %64 = dma.vmem_to_hbm [thread:$0]  %s62_s19, 1024, %s150_s3, [#allocation6]  }
  0x18   :  { %114 = dma.done.wait [#allocation6], 1024  }
  0x19   :  { %115 = vsyncadd [#allocation6], 4294966272 }
  0x1a   :  { %68 = vsyncpa [#allocation5], 1 }
  0x1b   :  { %69 = vsyncpa [#allocation6], 1 }

</bundles_post_ra>
